<compile_context>
chip_gen: v6e
topology: v6e:2x2x1
jax: 0.10.0
libtpu: 0.0.40
codegen_flags: <defaults>
</compile_context>

<pallas_src>
import functools

import jax
import jax.numpy as jnp
from jax import lax
from jax.experimental import pallas as pl
from jax.experimental.pallas import tpu as pltpu

KH = KW = 3        # kernel_size = 3, padding 'same' -> pad 1
BN_EPS = 1e-5      # nn.BatchNorm2d default eps


def _round_up(x, m):
    return (x + m - 1) // m * m


def _make_conv_stats_kernel(b_tile, cin_pad, cout_pad, H, W):
    """Builds the pass-1 kernel for static tile sizes.

    xflat_ref : (b_tile, cin_pad, (H+3)*(W+2))  pre-padded, flattened input
    w_ref     : (cout_pad, 9*cin_pad)           repacked conv weights
    y_ref     : (b_tile, cout_pad, H*(W+2))     conv output (junk at cols with x >= W)
    stats_ref : (1, 2, cout_pad)                per-step [sum; sumsq] partials (f32)
    patch_ref : (9*cin_pad, b_tile*H*(W+2))     im2col scratch
    """
    hw2 = H * (W + 2)

    def kernel(xflat_ref, w_ref, y_ref, stats_ref, patch_ref):
        # im2col: every tap is a contiguous lane slice of the flattened padded image —
        # no reshapes, no relayouts, sublane-aligned row blocks.
        for b in range(b_tile):
            for ky in range(KH):
                for kx in range(KW):
                    tap = ky * KW + kx
                    off = ky * (W + 2) + kx
                    patch_ref[tap * cin_pad:(tap + 1) * cin_pad,
                              b * hw2:(b + 1) * hw2] = xflat_ref[b, :, off:off + hw2]

        # Single wide MXU matmul per grid step, f32 accumulation.
        y = jnp.dot(w_ref[...], patch_ref[...], preferred_element_type=jnp.float32)

        # Lane-dense conv-output stores, one slab per batch element.
        for b in range(b_tile):
            y_ref[b] = y[:, b * hw2:(b + 1) * hw2].astype(y_ref.dtype)

        # BN partial statistics over VALID columns only (junk padding columns masked),
        # emitted lane-dense as (2, cout_pad): row 0 = sum, row 1 = sum of squares.
        col = lax.broadcasted_iota(jnp.int32, (1, b_tile * hw2), 1)
        valid = (col % (W + 2)) < W
        yv = jnp.where(valid, y, 0.0)
        stats_ref[0] = jnp.concatenate(
            [jnp.sum(yv, axis=1)[None, :], jnp.sum(yv * yv, axis=1)[None, :]], axis=0)

    return kernel


def _bn_relu_kernel(y_ref, scale_ref, shift_ref, o_ref):
    """Folded BN affine + ReLU, fully lane-dense elementwise pass."""
    z = y_ref[...].astype(jnp.float32) * scale_ref[...] + shift_ref[...]
    o_ref[...] = jnp.maximum(z, 0.0).astype(o_ref.dtype)


@functools.partial(jax.jit, static_argnames=("compute_dtype",))
def cbn_forward(x_nchw, weight_oihw, bias, gamma, beta, *, compute_dtype=jnp.bfloat16):
    """NCHW input -> NCHW output, matching CBN.forward (training-mode BatchNorm)."""
    del bias  # cancelled exactly by the training-mode batch-mean subtraction
    # TODO(synk): re-add the conv bias if this is ever evaluated with running BN statistics.
    N, Cin, H, W = x_nchw.shape
    Cout = weight_oihw.shape[0]
    HW2 = H * (W + 2)            # flattened valid+junk columns per image
    P = (H + 3) * (W + 2)        # 1 top + 2 bottom pad rows so tap slices never run OOB

    sub = 16 if compute_dtype == jnp.bfloat16 else 8
    Cin_pad = _round_up(Cin, sub)
    Cout_pad = _round_up(Cout, 8)
    ebytes = jnp.dtype(compute_dtype).itemsize

    # Pad once in XLA ('same' halo + zero channel rows), then flatten spatial dims so the
    # kernel takes every conv tap as a contiguous lane slice.
    x_pad = jnp.pad(x_nchw.astype(compute_dtype),
                    ((0, 0), (0, Cin_pad - Cin), (1, 2), (1, 1)))
    x_flat = x_pad.reshape(N, Cin_pad, P)

    # OIHW -> (Cout_pad, tap*Cin_pad + ci); zero rows/cols for the padded channels.
    w_p = jnp.zeros((Cout_pad, KH, KW, Cin_pad), jnp.float32)
    w_p = w_p.at[:Cout, :, :, :Cin].set(
        jnp.transpose(weight_oihw, (0, 2, 3, 1)).astype(jnp.float32))
    w_flat = w_p.reshape(Cout_pad, KH * KW * Cin_pad).astype(compute_dtype)

    # Batch tile: largest divisor of N whose per-step footprint fits a conservative budget
    # (sized for v5e's 16 MiB scoped-VMEM default).
    # TODO(synk): per-generation tile sizing + row-block tiling with a 1-row halo for large
    #             H/W (mandatory on v7x's 64 MiB VMEM; raise the budget on v6e's 128 MiB).
    budget = 10 * 1024 * 1024

    def step_bytes(bt):
        return (2 * bt * Cin_pad * P * ebytes                # x block (double buffered)
                + 2 * Cout_pad * KH * KW * Cin_pad * ebytes  # weights
                + 2 * bt * Cout_pad * HW2 * ebytes           # y block (double buffered)
                + KH * KW * Cin_pad * bt * HW2 * ebytes      # im2col scratch
                + 4096)

    B_TILE = 1
    for bt in range(1, N + 1):
        if N % bt == 0 and step_bytes(bt) <= budget:
            B_TILE = bt
    n_steps = N // B_TILE
    vmem_limit = int(min(64 * 1024 * 1024,
                         max(32 * 1024 * 1024, 2 * step_bytes(B_TILE))))

    conv_kernel = _make_conv_stats_kernel(B_TILE, Cin_pad, Cout_pad, H, W)
    y, stats = pl.pallas_call(
        conv_kernel,
        grid=(n_steps,),
        out_shape=(jax.ShapeDtypeStruct((N, Cout_pad, HW2), compute_dtype),
                   jax.ShapeDtypeStruct((n_steps, 2, Cout_pad), jnp.float32)),
        in_specs=[pl.BlockSpec((B_TILE, Cin_pad, P), lambda s: (s, 0, 0)),
                  pl.BlockSpec((Cout_pad, KH * KW * Cin_pad), lambda s: (0, 0))],
        out_specs=(pl.BlockSpec((B_TILE, Cout_pad, HW2), lambda s: (s, 0, 0)),
                   pl.BlockSpec((1, 2, Cout_pad), lambda s: (s, 0, 0))),
        scratch_shapes=[pltpu.VMEM((KH * KW * Cin_pad, B_TILE * HW2), compute_dtype)],
        compiler_params=pltpu.CompilerParams(
            dimension_semantics=("parallel",), vmem_limit_bytes=vmem_limit),
    )(x_flat, w_flat)

    # O(Cout) reduction of the streamed partials + folded BN affine, all in f32.
    m = jnp.float32(N * H * W)
    total = jnp.sum(stats, axis=0)                       # (2, Cout_pad)
    mean = total[0] / m
    var = jnp.maximum(total[1] / m - mean * mean, 0.0)   # clamp E[x^2]-E[x]^2 cancellation
    inv = lax.rsqrt(var + BN_EPS)
    g = jnp.zeros((Cout_pad,), jnp.float32).at[:Cout].set(gamma.astype(jnp.float32))
    b_ = jnp.zeros((Cout_pad,), jnp.float32).at[:Cout].set(beta.astype(jnp.float32))
    scale = (g * inv).reshape(Cout_pad, 1)
    shift = (b_ - mean * g * inv).reshape(Cout_pad, 1)

    # Pass 2: folded BN + ReLU over large lane-dense blocks.
    def p2_bytes(bt):
        return 2 * bt * Cout_pad * HW2 * (ebytes + 4) + 4096

    B2 = 1
    for bt in range(1, N + 1):
        if N % bt == 0 and p2_bytes(bt) <= budget:
            B2 = bt

    out = pl.pallas_call(
        _bn_relu_kernel,
        grid=(N // B2,),
        out_shape=jax.ShapeDtypeStruct((N, Cout_pad, HW2), jnp.float32),
        in_specs=[pl.BlockSpec((B2, Cout_pad, HW2), lambda s: (s, 0, 0)),
                  pl.BlockSpec((Cout_pad, 1), lambda s: (0, 0)),
                  pl.BlockSpec((Cout_pad, 1), lambda s: (0, 0))],
        out_specs=pl.BlockSpec((B2, Cout_pad, HW2), lambda s: (s, 0, 0)),
        compiler_params=pltpu.CompilerParams(
            dimension_semantics=("parallel",), vmem_limit_bytes=32 * 1024 * 1024),
    )(y, scale, shift)

    # Drop padded channels and the 2 junk columns per image row (pure XLA view/slice).
    return out.reshape(N, Cout_pad, H, W + 2)[:, :Cout, :, :W]


def _reference_cbn(x_nchw, weight_oihw, bias, gamma, beta):
    """Pure-JAX reference mirroring the PyTorch module (training-mode BN)."""
    y = lax.conv_general_dilated(
        x_nchw, weight_oihw, window_strides=(1, 1), padding="SAME",
        dimension_numbers=("NCHW", "OIHW", "NCHW"))
    y = y + bias[None, :, None, None]
    mean = jnp.mean(y, axis=(0, 2, 3), keepdims=True)
    var = jnp.mean((y - mean) ** 2, axis=(0, 2, 3), keepdims=True)
    y = (y - mean) * lax.rsqrt(var + BN_EPS)
    y = y * gamma[None, :, None, None] + beta[None, :, None, None]
    return jnp.maximum(y, 0.0)


if __name__ == "__main__":
    # Small shapes consistent with the module: N=2, Cin=4, Cout=8, 16x16 spatial.
    N, Cin, Cout, H, W = 2, 4, 8, 16, 16

    key = jax.random.PRNGKey(0)
    k_x, k_w, k_b = jax.random.split(key, 3)

    x = jax.random.normal(k_x, (N, Cin, H, W), dtype=jnp.float32)
    weight = 0.1 * jax.random.normal(k_w, (Cout, Cin, KH, KW), dtype=jnp.float32)
    bias = 0.1 * jax.random.normal(k_b, (Cout,), dtype=jnp.float32)
    gamma = jnp.ones((Cout,), dtype=jnp.float32)   # BatchNorm2d default init
    beta = jnp.zeros((Cout,), dtype=jnp.float32)

    ref = _reference_cbn(x, weight, bias, gamma, beta)

    # Exact-path check: f32 MXU operands against the f32 reference.
    out_f32 = jax.block_until_ready(
        cbn_forward(x, weight, bias, gamma, beta, compute_dtype=jnp.float32))
    assert out_f32.shape == (N, Cout, H, W), out_f32.shape
    err32 = float(jnp.max(jnp.abs(out_f32 - ref)))
    assert err32 < 1e-3, err32

    # Fast path: bf16 MXU operands / bf16 intermediate, f32 accumulation and BN statistics.
    out_bf16 = jax.block_until_ready(
        cbn_forward(x, weight, bias, gamma, beta, compute_dtype=jnp.bfloat16))
    err16 = float(jnp.max(jnp.abs(out_bf16 - ref)))
    assert err16 < 5e-2, err16

    print("KERNEL_OK")
</pallas_src>

<mosaic_0001>
module attributes {stable_mosaic.version = 11 : i64} {
  func.func @_bn_relu_kernel(%arg0: i32, %arg1: memref<2x8x288xf32, #tpu.memory_space<vmem>>, %arg2: memref<8x1xf32, #tpu.memory_space<vmem>>, %arg3: memref<8x1xf32, #tpu.memory_space<vmem>>, %arg4: memref<2x8x288xf32, #tpu.memory_space<vmem>>) attributes {dimension_semantics = [#tpu.dimension_semantics<parallel>], iteration_bounds = array<i64: 1>, scalar_prefetch = 0 : i64, scratch_operands = 0 : i64, tpu.core_type = #tpu.core_type<tc>, window_params = [{transform_indices = @transform_0, window_bounds = array<i64: 2, 8, 288>}, {pipeline_mode = #tpu.pipeline_mode<synchronous>, transform_indices = @transform_1, window_bounds = array<i64: 8, 1>}, {pipeline_mode = #tpu.pipeline_mode<synchronous>, transform_indices = @transform_2, window_bounds = array<i64: 8, 1>}, {transform_indices = @transform_3, window_bounds = array<i64: 2, 8, 288>}]} {
    %c0 = arith.constant 0 : index
    %c0_0 = arith.constant 0 : index
    %c0_1 = arith.constant 0 : index
    %0 = vector.load %arg1[%c0, %c0_0, %c0_1] : memref<2x8x288xf32, #tpu.memory_space<vmem>>, vector<2x8x288xf32>
    %c0_2 = arith.constant 0 : index
    %c0_3 = arith.constant 0 : index
    %1 = vector.load %arg2[%c0_2, %c0_3] : memref<8x1xf32, #tpu.memory_space<vmem>>, vector<8x1xf32>
    %2 = vector.shape_cast %1 : vector<8x1xf32> to vector<1x8x1xf32>
    %3 = vector.broadcast %2 : vector<1x8x1xf32> to vector<2x8x288xf32>
    %4 = arith.mulf %0, %3 : vector<2x8x288xf32>
    %c0_4 = arith.constant 0 : index
    %c0_5 = arith.constant 0 : index
    %5 = vector.load %arg3[%c0_4, %c0_5] : memref<8x1xf32, #tpu.memory_space<vmem>>, vector<8x1xf32>
    %6 = vector.shape_cast %5 : vector<8x1xf32> to vector<1x8x1xf32>
    %7 = vector.broadcast %6 : vector<1x8x1xf32> to vector<2x8x288xf32>
    %8 = arith.addf %4, %7 : vector<2x8x288xf32>
    %cst = arith.constant 0.000000e+00 : f32
    %9 = vector.broadcast %cst : f32 to vector<2x8x288xf32>
    %10 = arith.maximumf %8, %9 : vector<2x8x288xf32>
    %c0_6 = arith.constant 0 : index
    %c0_7 = arith.constant 0 : index
    %c0_8 = arith.constant 0 : index
    %11 = vector.load %arg4[%c0_6, %c0_7, %c0_8] : memref<2x8x288xf32, #tpu.memory_space<vmem>>, vector<2x8x288xf32>
    tpu.vector_store %arg4[%c0_6, %c0_7, %c0_8], %10 {strides = array<i32>} : memref<2x8x288xf32, #tpu.memory_space<vmem>>, vector<2x8x288xf32>,
    return
  }
  func.func @transform_0(%arg0: i32) -> (i32, i32, i32) {
    %c0_i32 = arith.constant 0 : i32
    %c0_i32_0 = arith.constant 0 : i32
    %c0_i32_1 = arith.constant 0 : i32
    return %arg0, %c0_i32, %c0_i32_0 : i32, i32, i32
  }
  func.func @transform_1(%arg0: i32) -> (i32, i32) {
    %c0_i32 = arith.constant 0 : i32
    %c0_i32_0 = arith.constant 0 : i32
    %c0_i32_1 = arith.constant 0 : i32
    return %c0_i32, %c0_i32_0 : i32, i32
  }
  func.func @transform_2(%arg0: i32) -> (i32, i32) {
    %c0_i32 = arith.constant 0 : i32
    %c0_i32_0 = arith.constant 0 : i32
    %c0_i32_1 = arith.constant 0 : i32
    return %c0_i32, %c0_i32_0 : i32, i32
  }
  func.func @transform_3(%arg0: i32) -> (i32, i32, i32) {
    %c0_i32 = arith.constant 0 : i32
    %c0_i32_0 = arith.constant 0 : i32
    %c0_i32_1 = arith.constant 0 : i32
    return %arg0, %c0_i32, %c0_i32_0 : i32, i32, i32
  }
}

module attributes {stable_mosaic.version = 11 : i64} {
  func.func @kernel(%arg0: i32, %arg1: memref<2x8x342xf32, #tpu.memory_space<vmem>>, %arg2: memref<8x72xf32, #tpu.memory_space<vmem>>, %arg3: memref<2x8x288xf32, #tpu.memory_space<vmem>>, %arg4: memref<1x2x8xf32, #tpu.memory_space<vmem>>, %arg5: memref<72x576xf32, #tpu.memory_space<vmem>>) attributes {dimension_semantics = [#tpu.dimension_semantics<parallel>], iteration_bounds = array<i64: 1>, scalar_prefetch = 0 : i64, scratch_operands = 1 : i64, tpu.core_type = #tpu.core_type<tc>, window_params = [{transform_indices = @transform_0, window_bounds = array<i64: 2, 8, 342>}, {pipeline_mode = #tpu.pipeline_mode<synchronous>, transform_indices = @transform_1, window_bounds = array<i64: 8, 72>}, {transform_indices = @transform_2, window_bounds = array<i64: 2, 8, 288>}, {transform_indices = @transform_3, window_bounds = array<i64: 1, 2, 8>}]} {
    %c0 = arith.constant 0 : index
    %c0_0 = arith.constant 0 : index
    %c0_1 = arith.constant 0 : index
    %0 = vector.load %arg1[%c0, %c0_0, %c0_1] : memref<2x8x342xf32, #tpu.memory_space<vmem>>, vector<1x8x288xf32>
    %1 = vector.shape_cast %0 : vector<1x8x288xf32> to vector<8x288xf32>
    %c0_2 = arith.constant 0 : index
    %c0_3 = arith.constant 0 : index
    %2 = vector.load %arg5[%c0_2, %c0_3] : memref<72x576xf32, #tpu.memory_space<vmem>>, vector<8x288xf32>
    tpu.vector_store %arg5[%c0_2, %c0_3], %1 {strides = array<i32>} : memref<72x576xf32, #tpu.memory_space<vmem>>, vector<8x288xf32>,
    %c0_4 = arith.constant 0 : index
    %c0_5 = arith.constant 0 : index
    %c1 = arith.constant 1 : index
    %3 = vector.load %arg1[%c0_4, %c0_5, %c1] : memref<2x8x342xf32, #tpu.memory_space<vmem>>, vector<1x8x288xf32>
    %4 = vector.shape_cast %3 : vector<1x8x288xf32> to vector<8x288xf32>
    %c8 = arith.constant 8 : index
    %c0_6 = arith.constant 0 : index
    %5 = vector.load %arg5[%c8, %c0_6] : memref<72x576xf32, #tpu.memory_space<vmem>>, vector<8x288xf32>
    tpu.vector_store %arg5[%c8, %c0_6], %4 {strides = array<i32>} : memref<72x576xf32, #tpu.memory_space<vmem>>, vector<8x288xf32>,
    %c0_7 = arith.constant 0 : index
    %c0_8 = arith.constant 0 : index
    %c2 = arith.constant 2 : index
    %6 = vector.load %arg1[%c0_7, %c0_8, %c2] : memref<2x8x342xf32, #tpu.memory_space<vmem>>, vector<1x8x288xf32>
    %7 = vector.shape_cast %6 : vector<1x8x288xf32> to vector<8x288xf32>
    %c16 = arith.constant 16 : index
    %c0_9 = arith.constant 0 : index
    %8 = vector.load %arg5[%c16, %c0_9] : memref<72x576xf32, #tpu.memory_space<vmem>>, vector<8x288xf32>
    tpu.vector_store %arg5[%c16, %c0_9], %7 {strides = array<i32>} : memref<72x576xf32, #tpu.memory_space<vmem>>, vector<8x288xf32>,
    %c0_10 = arith.constant 0 : index
    %c0_11 = arith.constant 0 : index
    %c18 = arith.constant 18 : index
    %9 = vector.load %arg1[%c0_10, %c0_11, %c18] : memref<2x8x342xf32, #tpu.memory_space<vmem>>, vector<1x8x288xf32>
    %10 = vector.shape_cast %9 : vector<1x8x288xf32> to vector<8x288xf32>
    %c24 = arith.constant 24 : index
    %c0_12 = arith.constant 0 : index
    %11 = vector.load %arg5[%c24, %c0_12] : memref<72x576xf32, #tpu.memory_space<vmem>>, vector<8x288xf32>
    tpu.vector_store %arg5[%c24, %c0_12], %10 {strides = array<i32>} : memref<72x576xf32, #tpu.memory_space<vmem>>, vector<8x288xf32>,
    %c0_13 = arith.constant 0 : index
    %c0_14 = arith.constant 0 : index
    %c19 = arith.constant 19 : index
    %12 = vector.load %arg1[%c0_13, %c0_14, %c19] : memref<2x8x342xf32, #tpu.memory_space<vmem>>, vector<1x8x288xf32>
    %13 = vector.shape_cast %12 : vector<1x8x288xf32> to vector<8x288xf32>
    %c32 = arith.constant 32 : index
    %c0_15 = arith.constant 0 : index
    %14 = vector.load %arg5[%c32, %c0_15] : memref<72x576xf32, #tpu.memory_space<vmem>>, vector<8x288xf32>
    tpu.vector_store %arg5[%c32, %c0_15], %13 {strides = array<i32>} : memref<72x576xf32, #tpu.memory_space<vmem>>, vector<8x288xf32>,
    %c0_16 = arith.constant 0 : index
    %c0_17 = arith.constant 0 : index
    %c20 = arith.constant 20 : index
    %15 = vector.load %arg1[%c0_16, %c0_17, %c20] : memref<2x8x342xf32, #tpu.memory_space<vmem>>, vector<1x8x288xf32>
    %16 = vector.shape_cast %15 : vector<1x8x288xf32> to vector<8x288xf32>
    %c40 = arith.constant 40 : index
    %c0_18 = arith.constant 0 : index
    %17 = vector.load %arg5[%c40, %c0_18] : memref<72x576xf32, #tpu.memory_space<vmem>>, vector<8x288xf32>
    tpu.vector_store %arg5[%c40, %c0_18], %16 {strides = array<i32>} : memref<72x576xf32, #tpu.memory_space<vmem>>, vector<8x288xf32>,
    %c0_19 = arith.constant 0 : index
    %c0_20 = arith.constant 0 : index
    %c36 = arith.constant 36 : index
    %18 = vector.load %arg1[%c0_19, %c0_20, %c36] : memref<2x8x342xf32, #tpu.memory_space<vmem>>, vector<1x8x288xf32>
    %19 = vector.shape_cast %18 : vector<1x8x288xf32> to vector<8x288xf32>
    %c48 = arith.constant 48 : index
    %c0_21 = arith.constant 0 : index
    %20 = vector.load %arg5[%c48, %c0_21] : memref<72x576xf32, #tpu.memory_space<vmem>>, vector<8x288xf32>
    tpu.vector_store %arg5[%c48, %c0_21], %19 {strides = array<i32>} : memref<72x576xf32, #tpu.memory_space<vmem>>, vector<8x288xf32>,
    %c0_22 = arith.constant 0 : index
    %c0_23 = arith.constant 0 : index
    %c37 = arith.constant 37 : index
    %21 = vector.load %arg1[%c0_22, %c0_23, %c37] : memref<2x8x342xf32, #tpu.memory_space<vmem>>, vector<1x8x288xf32>
    %22 = vector.shape_cast %21 : vector<1x8x288xf32> to vector<8x288xf32>
    %c56 = arith.constant 56 : index
    %c0_24 = arith.constant 0 : index
    %23 = vector.load %arg5[%c56, %c0_24] : memref<72x576xf32, #tpu.memory_space<vmem>>, vector<8x288xf32>
    tpu.vector_store %arg5[%c56, %c0_24], %22 {strides = array<i32>} : memref<72x576xf32, #tpu.memory_space<vmem>>, vector<8x288xf32>,
    %c0_25 = arith.constant 0 : index
    %c0_26 = arith.constant 0 : index
    %c38 = arith.constant 38 : index
    %24 = vector.load %arg1[%c0_25, %c0_26, %c38] : memref<2x8x342xf32, #tpu.memory_space<vmem>>, vector<1x8x288xf32>
    %25 = vector.shape_cast %24 : vector<1x8x288xf32> to vector<8x288xf32>
    %c64 = arith.constant 64 : index
    %c0_27 = arith.constant 0 : index
    %26 = vector.load %arg5[%c64, %c0_27] : memref<72x576xf32, #tpu.memory_space<vmem>>, vector<8x288xf32>
    tpu.vector_store %arg5[%c64, %c0_27], %25 {strides = array<i32>} : memref<72x576xf32, #tpu.memory_space<vmem>>, vector<8x288xf32>,
    %c1_28 = arith.constant 1 : index
    %c0_29 = arith.constant 0 : index
    %c0_30 = arith.constant 0 : index
    %27 = vector.load %arg1[%c1_28, %c0_29, %c0_30] : memref<2x8x342xf32, #tpu.memory_space<vmem>>, vector<1x8x288xf32>
    %28 = vector.shape_cast %27 : vector<1x8x288xf32> to vector<8x288xf32>
    %c0_31 = arith.constant 0 : index
    %c288 = arith.constant 288 : index
    %29 = vector.load %arg5[%c0_31, %c288] : memref<72x576xf32, #tpu.memory_space<vmem>>, vector<8x288xf32>
    tpu.vector_store %arg5[%c0_31, %c288], %28 {strides = array<i32>} : memref<72x576xf32, #tpu.memory_space<vmem>>, vector<8x288xf32>,
    %c1_32 = arith.constant 1 : index
    %c0_33 = arith.constant 0 : index
    %c1_34 = arith.constant 1 : index
    %30 = vector.load %arg1[%c1_32, %c0_33, %c1_34] : memref<2x8x342xf32, #tpu.memory_space<vmem>>, vector<1x8x288xf32>
    %31 = vector.shape_cast %30 : vector<1x8x288xf32> to vector<8x288xf32>
    %c8_35 = arith.constant 8 : index
    %c288_36 = arith.constant 288 : index
    %32 = vector.load %arg5[%c8_35, %c288_36] : memref<72x576xf32, #tpu.memory_space<vmem>>, vector<8x288xf32>
    tpu.vector_store %arg5[%c8_35, %c288_36], %31 {strides = array<i32>} : memref<72x576xf32, #tpu.memory_space<vmem>>, vector<8x288xf32>,
    %c1_37 = arith.constant 1 : index
    %c0_38 = arith.constant 0 : index
    %c2_39 = arith.constant 2 : index
    %33 = vector.load %arg1[%c1_37, %c0_38, %c2_39] : memref<2x8x342xf32, #tpu.memory_space<vmem>>, vector<1x8x288xf32>
    %34 = vector.shape_cast %33 : vector<1x8x288xf32> to vector<8x288xf32>
    %c16_40 = arith.constant 16 : index
    %c288_41 = arith.constant 288 : index
    %35 = vector.load %arg5[%c16_40, %c288_41] : memref<72x576xf32, #tpu.memory_space<vmem>>, vector<8x288xf32>
    tpu.vector_store %arg5[%c16_40, %c288_41], %34 {strides = array<i32>} : memref<72x576xf32, #tpu.memory_space<vmem>>, vector<8x288xf32>,
    %c1_42 = arith.constant 1 : index
    %c0_43 = arith.constant 0 : index
    %c18_44 = arith.constant 18 : index
    %36 = vector.load %arg1[%c1_42, %c0_43, %c18_44] : memref<2x8x342xf32, #tpu.memory_space<vmem>>, vector<1x8x288xf32>
    %37 = vector.shape_cast %36 : vector<1x8x288xf32> to vector<8x288xf32>
    %c24_45 = arith.constant 24 : index
    %c288_46 = arith.constant 288 : index
    %38 = vector.load %arg5[%c24_45, %c288_46] : memref<72x576xf32, #tpu.memory_space<vmem>>, vector<8x288xf32>
    tpu.vector_store %arg5[%c24_45, %c288_46], %37 {strides = array<i32>} : memref<72x576xf32, #tpu.memory_space<vmem>>, vector<8x288xf32>,
    %c1_47 = arith.constant 1 : index
    %c0_48 = arith.constant 0 : index
    %c19_49 = arith.constant 19 : index
    %39 = vector.load %arg1[%c1_47, %c0_48, %c19_49] : memref<2x8x342xf32, #tpu.memory_space<vmem>>, vector<1x8x288xf32>
    %40 = vector.shape_cast %39 : vector<1x8x288xf32> to vector<8x288xf32>
    %c32_50 = arith.constant 32 : index
    %c288_51 = arith.constant 288 : index
    %41 = vector.load %arg5[%c32_50, %c288_51] : memref<72x576xf32, #tpu.memory_space<vmem>>, vector<8x288xf32>
    tpu.vector_store %arg5[%c32_50, %c288_51], %40 {strides = array<i32>} : memref<72x576xf32, #tpu.memory_space<vmem>>, vector<8x288xf32>,
    %c1_52 = arith.constant 1 : index
    %c0_53 = arith.constant 0 : index
    %c20_54 = arith.constant 20 : index
    %42 = vector.load %arg1[%c1_52, %c0_53, %c20_54] : memref<2x8x342xf32, #tpu.memory_space<vmem>>, vector<1x8x288xf32>
    %43 = vector.shape_cast %42 : vector<1x8x288xf32> to vector<8x288xf32>
    %c40_55 = arith.constant 40 : index
    %c288_56 = arith.constant 288 : index
    %44 = vector.load %arg5[%c40_55, %c288_56] : memref<72x576xf32, #tpu.memory_space<vmem>>, vector<8x288xf32>
    tpu.vector_store %arg5[%c40_55, %c288_56], %43 {strides = array<i32>} : memref<72x576xf32, #tpu.memory_space<vmem>>, vector<8x288xf32>,
    %c1_57 = arith.constant 1 : index
    %c0_58 = arith.constant 0 : index
    %c36_59 = arith.constant 36 : index
    %45 = vector.load %arg1[%c1_57, %c0_58, %c36_59] : memref<2x8x342xf32, #tpu.memory_space<vmem>>, vector<1x8x288xf32>
    %46 = vector.shape_cast %45 : vector<1x8x288xf32> to vector<8x288xf32>
    %c48_60 = arith.constant 48 : index
    %c288_61 = arith.constant 288 : index
    %47 = vector.load %arg5[%c48_60, %c288_61] : memref<72x576xf32, #tpu.memory_space<vmem>>, vector<8x288xf32>
    tpu.vector_store %arg5[%c48_60, %c288_61], %46 {strides = array<i32>} : memref<72x576xf32, #tpu.memory_space<vmem>>, vector<8x288xf32>,
    %c1_62 = arith.constant 1 : index
    %c0_63 = arith.constant 0 : index
    %c37_64 = arith.constant 37 : index
    %48 = vector.load %arg1[%c1_62, %c0_63, %c37_64] : memref<2x8x342xf32, #tpu.memory_space<vmem>>, vector<1x8x288xf32>
    %49 = vector.shape_cast %48 : vector<1x8x288xf32> to vector<8x288xf32>
    %c56_65 = arith.constant 56 : index
    %c288_66 = arith.constant 288 : index
    %50 = vector.load %arg5[%c56_65, %c288_66] : memref<72x576xf32, #tpu.memory_space<vmem>>, vector<8x288xf32>
    tpu.vector_store %arg5[%c56_65, %c288_66], %49 {strides = array<i32>} : memref<72x576xf32, #tpu.memory_space<vmem>>, vector<8x288xf32>,
    %c1_67 = arith.constant 1 : index
    %c0_68 = arith.constant 0 : index
    %c38_69 = arith.constant 38 : index
    %51 = vector.load %arg1[%c1_67, %c0_68, %c38_69] : memref<2x8x342xf32, #tpu.memory_space<vmem>>, vector<1x8x288xf32>
    %52 = vector.shape_cast %51 : vector<1x8x288xf32> to vector<8x288xf32>
    %c64_70 = arith.constant 64 : index
    %c288_71 = arith.constant 288 : index
    %53 = vector.load %arg5[%c64_70, %c288_71] : memref<72x576xf32, #tpu.memory_space<vmem>>, vector<8x288xf32>
    tpu.vector_store %arg5[%c64_70, %c288_71], %52 {strides = array<i32>} : memref<72x576xf32, #tpu.memory_space<vmem>>, vector<8x288xf32>,
    %c0_72 = arith.constant 0 : index
    %c0_73 = arith.constant 0 : index
    %54 = vector.load %arg2[%c0_72, %c0_73] : memref<8x72xf32, #tpu.memory_space<vmem>>, vector<8x72xf32>
    %c0_74 = arith.constant 0 : index
    %c0_75 = arith.constant 0 : index
    %55 = vector.load %arg5[%c0_74, %c0_75] : memref<72x576xf32, #tpu.memory_space<vmem>>, vector<72x576xf32>
    %cst = arith.constant dense<0.000000e+00> : vector<8x576xf32>
    %56 = tpu.matmul %54, %55, %cst {dimension_numbers = #tpu.dot_dimension_numbers<[1], [0], [0], [1], [0, 0, 1, 1], [], []>} : vector<8x72xf32>, vector<72x576xf32>, vector<8x576xf32> -> vector<8x576xf32>
    %57 = vector.extract_strided_slice %56 {offsets = [0, 0], sizes = [8, 288], strides = [1, 1]} : vector<8x576xf32> to vector<8x288xf32>
    %c0_76 = arith.constant 0 : index
    %c0_77 = arith.constant 0 : index
    %c0_78 = arith.constant 0 : index
    %58 = vector.load %arg3[%c0_76, %c0_77, %c0_78] : memref<2x8x288xf32, #tpu.memory_space<vmem>>, vector<1x8x288xf32>
    %59 = vector.shape_cast %58 : vector<1x8x288xf32> to vector<8x288xf32>
    %60 = vector.shape_cast %57 : vector<8x288xf32> to vector<1x8x288xf32>
    tpu.vector_store %arg3[%c0_76, %c0_77, %c0_78], %60 {strides = array<i32>} : memref<2x8x288xf32, #tpu.memory_space<vmem>>, vector<1x8x288xf32>,
    %61 = vector.extract_strided_slice %56 {offsets = [0, 288], sizes = [8, 288], strides = [1, 1]} : vector<8x576xf32> to vector<8x288xf32>
    %c1_79 = arith.constant 1 : index
    %c0_80 = arith.constant 0 : index
    %c0_81 = arith.constant 0 : index
    %62 = vector.load %arg3[%c1_79, %c0_80, %c0_81] : memref<2x8x288xf32, #tpu.memory_space<vmem>>, vector<1x8x288xf32>
    %63 = vector.shape_cast %62 : vector<1x8x288xf32> to vector<8x288xf32>
    %64 = vector.shape_cast %61 : vector<8x288xf32> to vector<1x8x288xf32>
    tpu.vector_store %arg3[%c1_79, %c0_80, %c0_81], %64 {strides = array<i32>} : memref<2x8x288xf32, #tpu.memory_space<vmem>>, vector<1x8x288xf32>,
    %65 = tpu.iota {dimensions = array<i32: 1>} : vector<1x576xi32>
    %c18_i32 = arith.constant 18 : i32
    %c0_i32 = arith.constant 0 : i32
    %66 = arith.cmpi eq, %c18_i32, %c0_i32 : i32
    %c1_i32 = arith.constant 1 : i32
    %67 = arith.select %66, %c1_i32, %c18_i32 : i32
    %68 = vector.broadcast %67 : i32 to vector<1x576xi32>
    %69 = arith.remsi %65, %68 : vector<1x576xi32>
    %c0_i32_82 = arith.constant 0 : i32
    %70 = vector.broadcast %c0_i32_82 : i32 to vector<1x576xi32>
    %71 = arith.cmpi ne, %69, %70 : vector<1x576xi32>
    %c0_i32_83 = arith.constant 0 : i32
    %72 = vector.broadcast %c0_i32_83 : i32 to vector<1x576xi32>
    %73 = arith.cmpi slt, %69, %72 : vector<1x576xi32>
    %c0_i32_84 = arith.constant 0 : i32
    %74 = arith.cmpi slt, %67, %c0_i32_84 : i32
    %75 = vector.broadcast %74 : i1 to vector<1x576xi1>
    %76 = vector.broadcast %75 : vector<1x576xi1> to vector<1x576xi1>
    %77 = arith.xori %73, %76 : vector<1x576xi1>
    %78 = arith.andi %77, %71 : vector<1x576xi1>
    %79 = vector.broadcast %67 : i32 to vector<1x576xi32>
    %80 = arith.addi %69, %79 : vector<1x576xi32>
    %81 = arith.select %78, %80, %69 : vector<1x576xi1>, vector<1x576xi32>
    %c16_i32 = arith.constant 16 : i32
    %82 = vector.broadcast %c16_i32 : i32 to vector<1x576xi32>
    %83 = arith.cmpi slt, %81, %82 : vector<1x576xi32>
    %cst_85 = arith.constant 0.000000e+00 : f32
    %84 = vector.shape_cast %83 : vector<1x576xi1> to vector<1x576xi1>
    %85 = vector.broadcast %84 : vector<1x576xi1> to vector<8x576xi1>
    %86 = vector.broadcast %cst_85 : f32 to vector<8x576xf32>
    %87 = arith.select %85, %56, %86 : vector<8x576xi1>, vector<8x576xf32>
    %cst_86 = arith.constant dense<0.000000e+00> : vector<8xf32>
    %88 = vector.multi_reduction <add>, %87, %cst_86 [1] : vector<8x576xf32> to vector<8xf32>
    %89 = vector.shape_cast %88 : vector<8xf32> to vector<1x8xf32>
    %90 = arith.mulf %87, %87 : vector<8x576xf32>
    %cst_87 = arith.constant dense<0.000000e+00> : vector<8xf32>
    %91 = vector.multi_reduction <add>, %90, %cst_87 [1] : vector<8x576xf32> to vector<8xf32>
    %92 = vector.shape_cast %91 : vector<8xf32> to vector<1x8xf32>
    %93 = tpu.concatenate %89, %92 in 0 : vector<1x8xf32>, vector<1x8xf32> -> vector<2x8xf32>
    %c0_88 = arith.constant 0 : index
    %c0_89 = arith.constant 0 : index
    %c0_90 = arith.constant 0 : index
    %94 = vector.load %arg4[%c0_88, %c0_89, %c0_90] : memref<1x2x8xf32, #tpu.memory_space<vmem>>, vector<1x2x8xf32>
    %95 = vector.shape_cast %94 : vector<1x2x8xf32> to vector<2x8xf32>
    %96 = vector.shape_cast %93 : vector<2x8xf32> to vector<1x2x8xf32>
    tpu.vector_store %arg4[%c0_88, %c0_89, %c0_90], %96 {strides = array<i32>} : memref<1x2x8xf32, #tpu.memory_space<vmem>>, vector<1x2x8xf32>,
    return
  }
  func.func @transform_0(%arg0: i32) -> (i32, i32, i32) {
    %c0_i32 = arith.constant 0 : i32
    %c0_i32_0 = arith.constant 0 : i32
    %c0_i32_1 = arith.constant 0 : i32
    return %arg0, %c0_i32, %c0_i32_0 : i32, i32, i32
  }
  func.func @transform_1(%arg0: i32) -> (i32, i32) {
    %c0_i32 = arith.constant 0 : i32
    %c0_i32_0 = arith.constant 0 : i32
    %c0_i32_1 = arith.constant 0 : i32
    return %c0_i32, %c0_i32_0 : i32, i32
  }
  func.func @transform_2(%arg0: i32) -> (i32, i32, i32) {
    %c0_i32 = arith.constant 0 : i32
    %c0_i32_0 = arith.constant 0 : i32
    %c0_i32_1 = arith.constant 0 : i32
    return %arg0, %c0_i32, %c0_i32_0 : i32, i32, i32
  }
  func.func @transform_3(%arg0: i32) -> (i32, i32, i32) {
    %c0_i32 = arith.constant 0 : i32
    %c0_i32_0 = arith.constant 0 : i32
    %c0_i32_1 = arith.constant 0 : i32
    return %arg0, %c0_i32, %c0_i32_0 : i32, i32, i32
  }
}

</mosaic_0001>

<bundles_post_ra>
// kernel: cbn_forward.3
= control target key start
LH: loop header
LB: loop body
LE: loop exit
PB: predicated region body
PF: predicated region fallthrough
CT: control target
= control target key end

     0   :  { %v63_v0 = vmov 0   ;;  %vm52_vm0 = vcmask 261120   ;;  %s126_s1 = inlined_call_operand.vmem [shape: f32[8,1], index: 1, kind: input, shape index: {}]   ;;  %s127_s2 = inlined_call_operand.vmem [shape: f32[8,1], index: 2, kind: input, shape index: {}]   ;;  %s128_s0 = inlined_call_operand.vmem [shape: f32[2,8,288], index: 0, kind: input, shape index: {}]   ;;  %s129_s3 = inlined_call_operand.vmem [shape: f32[2,8,288], index: 3, kind: output, shape index: {}]  }
   0x1   :  { %62 = vset.pattern.permute.xlu0 %v63_v0  ;;  %v20_v1 = vld [vmem:[%s126_s1] sm:$0xff]  ;;  %v15_v5 = vld [vmem:[%s128_s0 + $0x8] sm:$0xff]  ;;  %v16_v6 = vld [vmem:[%s128_s0 + $0x10] sm:$0xff] }
   0x2   :  { %23 = vperm.xlu0 %62, %v20_v1   ;;  %v32_v2 = vld [vmem:[%s127_s2] sm:$0xff]  ;;  %v17_v7 = vld [vmem:[%s128_s0 + $0x18] sm:$0xff]  ;;  %v19_v9 = vld [vmem:[%s128_s0 + $0x28] sm:$0xff] }
   0x3   :  { %v14_v3 = vld [vmem:[%s128_s0] sm:$0xff] }
   0x4   :  { %v18_v8 = vld [vmem:[%s128_s0 + $0x20] sm:$0xff] }
   0x6   :  { %35 = vperm.xlu0 %62, %v32_v2  }
  0x7d   :  { %v24_v4 = vpop.permute.xlu0 %23 }
  0x7e   :  { %v26_v10 = vmul.f32 %v24_v4, %v14_v3  ;;  %v27_v11 = vmul.f32 %v24_v4, %v15_v5  ;;  %v28_v12 = vmul.f32 %v24_v4, %v16_v6  ;;  %v29_v13 = vmul.f32 %v24_v4, %v17_v7 }
  0x7f   :  { %v30_v15 = vmul.f32 %v24_v4, %v18_v8  ;;  %v31_v16 = vmul.f32 %v24_v4, %v19_v9 }
  0x81   :  { %v36_v14 = vpop.permute.xlu0 %35 }
  0x82   :  { %v38_v17 = vadd.f32 %v36_v14, %v26_v10  ;;  %v39_v18 = vadd.f32 %v36_v14, %v27_v11  ;;  %v40_v19 = vadd.f32 %v36_v14, %v28_v12  ;;  %v41_v20 = vadd.f32 %v36_v14, %v29_v13 }
  0x83   :  { %v42_v21 = vadd.f32 %v36_v14, %v30_v15  ;;  %v43_v22 = vadd.f32 %v36_v14, %v31_v16 }
  0x84   :  { %v44_v23 = vmax.f32 %v38_v17, 0.0  ;;  %v45_v24 = vmax.f32 %v39_v18, 0.0  ;;  %v46_v25 = vmax.f32 %v40_v19, 0.0  ;;  %v47_v26 = vmax.f32 %v41_v20, 0.0 }
  0x85   :  { %v48_v27 = vmax.f32 %v42_v21, 0.0  ;;  %v49_v28 = vmax.f32 %v43_v22, 0.0 }
  0x86   :  { %50 = vst [vmem:[%s129_s3] sm:$0xff] %v44_v23  ;;  %51 = vst [vmem:[%s129_s3 + $0x8] sm:$0xff] %v45_v24 }
  0x87   :  { %53 = vst.msk [vmem:[%s129_s3 + $0x10] sm:$0xff] %vm52_vm0, %v46_v25  ;;  %54 = vst [vmem:[%s129_s3 + $0x18] sm:$0xff] %v47_v26 }
  0x88   :  { %55 = vst [vmem:[%s129_s3 + $0x20] sm:$0xff] %v48_v27  ;;  %56 = vst.msk [vmem:[%s129_s3 + $0x28] sm:$0xff] %vm52_vm0, %v49_v28 }

// kernel: cbn_forward.2
= control target key start
LH: loop header
LB: loop body
LE: loop exit
PB: predicated region body
PF: predicated region fallthrough
CT: control target
= control target key end

     0   :  { %vm18_vm0 = vcmask 261120   ;;  %s906_s18 = smov 90   ;;  %s907_s19 = smov 91   ;;  %v914_v5 = vmov 0.0   ;;  %vm179_vm1 = vcmask 736256   ;;  %vm158_vm2 = vcmask 744448   ;;  %s1112_s0 = inlined_call_operand.vmem [shape: f32[2,8,342], index: 0, kind: input, shape index: {}]   ;;  %s1113_s1 = inlined_call_operand.vmem [shape: f32[8,72], index: 1, kind: input, shape index: {}]   ;;  %s1114_s2 = inlined_call_operand.vmem [shape: f32[2,8,288], index: 2, kind: output, shape index: {0}]   ;;  %s1115_s3 = inlined_call_operand.vmem [shape: f32[1,2,8], index: 3, kind: output, shape index: {1}]  }
   0x1   :  { %v949_v0 = vld [vmem:[%s1112_s0 + $0x8] sm:$0xff]  ;;  %v954_v1 = vld [vmem:[%s1112_s0] sm:$0xff]  ;;  %v169_v2 = vld [vmem:[%s1112_s0 + $0x10] sm:$0xff]  ;;  %s908_s20 = smov 92   ;;  %s909_s21 = smov 108   ;;  %493 = vmatprep.mubr.f32.mxu0 %v914_v5  ;;  %564 = vmatprep.mubr.f32.mxu1 %v914_v5  ;;  %vm137_vm3 = vcmask 752640  }
   0x2   :  { %175 = vrot.lane.b32.xlu0 %v949_v0, %s906_s18  ;;  %173 = vrot.lane.b32.xlu1 %v954_v1, %s906_s18  ;;  %19 = vst.msk [vmem:[#allocation2 + $0x10] sm:$0xff] %vm18_vm0, %v169_v2  ;;  %s910_s22 = smov 109   ;;  %s911_s23 = smov 110   ;;  %v837_v3 = vld [vmem:[%s1112_s0 + $0x20] sm:$0xff]  ;;  %v838_v4 = vld [vmem:[%s1112_s0 + $0x28] sm:$0xff]  ;;  %vm116_vm4 = vcmask 883712  }
   0x3   :  { %s912_s24 = smov 126   ;;  %s913_s25 = smov 127   ;;  %v836_v6 = vld [vmem:[%s1112_s0 + $0x18] sm:$0xff]  ;;  %vm95_vm5 = vcmask 891904   ;;  %vm74_vm6 = vcmask 900096   ;;  %vm53_vm7 = vcmask 1031168  }
   0x4   :  { %s915_s30 = smov 122   ;;  %s916_s6 = smov 123   ;;  %vm32_vm8 = vcmask 1039360   ;;  %vm1116_vm9 = vcmask 523264   ;;  %vm370_vm10 = vcmask 998400   ;;  %v999_v49 = vld [vmem:[%s1113_s1] sm:$0xff] }
   0x5   :  { %s917_s7 = smov 124   ;;  %s918_s8 = smov 12   ;;  %vm425_vm11 = vcmask 588800   ;;  %vm206_vm12 = vcmask 1047808   ;;  %vm924_vm13 = vmmov 0   ;;  %vm349_vm14 = vcmask 1006592  }
   0x6   :  { %177 = vrot.lane.b32.xlu0 %v169_v2, %s906_s18  ;;  %154 = vrot.lane.b32.xlu1 %v949_v0, %s907_s19  ;;  %s919_s9 = smov 13   ;;  %s920_s10 = smov 14   ;;  %vm328_vm15 = vcmask 1014784  }
   0x7   :  { %s921_s0 = smov 30   ;;  %s922_s11 = smov 31  }
   0x8   :  { %s923_s12 = smov 32  }
   0xa   :  { %156 = vrot.lane.b32.xlu0 %v169_v2, %s907_s19  ;;  %152 = vrot.lane.b32.xlu1 %v954_v1, %s907_s19 }
   0xe   :  { %135 = vrot.lane.b32.xlu1 %v169_v2, %s908_s20  ;;  %133 = vrot.lane.b32.xlu0 %v949_v0, %s908_s20 }
  0x12   :  { %131 = vrot.lane.b32.xlu0 %v954_v1, %s908_s20  ;;  %112 = vrot.lane.b32.xlu1 %v949_v0, %s909_s21  ;;  %s925_s20 = smov 96  }
  0x16   :  { %114 = vrot.lane.b32.xlu0 %v169_v2, %s909_s21  ;;  %110 = vrot.lane.b32.xlu1 %v954_v1, %s909_s21 }
  0x1a   :  { %93 = vrot.lane.b32.xlu1 %v169_v2, %s910_s22  ;;  %91 = vrot.lane.b32.xlu0 %v949_v0, %s910_s22 }
  0x1e   :  { %89 = vrot.lane.b32.xlu0 %v954_v1, %s910_s22  ;;  %70 = vrot.lane.b32.xlu1 %v949_v0, %s911_s23 }
  0x22   :  { %72 = vrot.lane.b32.xlu0 %v169_v2, %s911_s23  ;;  %68 = vrot.lane.b32.xlu1 %v954_v1, %s911_s23 }
  0x26   :  { %51 = vrot.lane.b32.xlu1 %v169_v2, %s912_s24  ;;  %49 = vrot.lane.b32.xlu0 %v949_v0, %s912_s24 }
  0x2a   :  { %47 = vrot.lane.b32.xlu0 %v954_v1, %s912_s24  ;;  %28 = vrot.lane.b32.xlu1 %v949_v0, %s913_s25 }
  0x2e   :  { %30 = vrot.lane.b32.xlu0 %v169_v2, %s913_s25  ;;  %26 = vrot.lane.b32.xlu1 %v954_v1, %s913_s25 }
  0x32   :  { %366 = vrot.lane.b32.xlu0 %v837_v3, %s915_s30  ;;  %368 = vrot.lane.b32.xlu1 %v838_v4, %s915_s30 }
  0x36   :  { %364 = vrot.lane.b32.xlu0 %v836_v6, %s915_s30  ;;  %345 = vrot.lane.b32.xlu1 %v837_v3, %s916_s6 }
  0x3a   :  { %347 = vrot.lane.b32.xlu0 %v838_v4, %s916_s6  ;;  %343 = vrot.lane.b32.xlu1 %v836_v6, %s916_s6 }
  0x3e   :  { %324 = vrot.lane.b32.xlu0 %v837_v3, %s917_s7  ;;  %326 = vrot.lane.b32.xlu1 %v838_v4, %s917_s7 }
  0x42   :  { %322 = vrot.lane.b32.xlu0 %v836_v6, %s917_s7  ;;  %301 = vrot.lane.b32.xlu1 %v836_v6, %s918_s8 }
  0x46   :  { %303 = vrot.lane.b32.xlu0 %v837_v3, %s918_s8  ;;  %280 = vrot.lane.b32.xlu1 %v836_v6, %s919_s9 }
  0x4a   :  { %282 = vrot.lane.b32.xlu0 %v837_v3, %s919_s9  ;;  %259 = vrot.lane.b32.xlu1 %v836_v6, %s920_s10 }
  0x4e   :  { %261 = vrot.lane.b32.xlu0 %v837_v3, %s920_s10  ;;  %305 = vrot.lane.b32.xlu1 %v838_v4, %s918_s8 }
  0x52   :  { %238 = vrot.lane.b32.xlu0 %v836_v6, %s921_s0  ;;  %240 = vrot.lane.b32.xlu1 %v837_v3, %s921_s0 }
  0x56   :  { %284 = vrot.lane.b32.xlu0 %v838_v4, %s919_s9  ;;  %217 = vrot.lane.b32.xlu1 %v836_v6, %s922_s11 }
  0x5a   :  { %219 = vrot.lane.b32.xlu0 %v837_v3, %s922_s11  ;;  %263 = vrot.lane.b32.xlu1 %v838_v4, %s920_s10 }
  0x5e   :  { %195 = vrot.lane.b32.xlu0 %v836_v6, %s923_s12  ;;  %197 = vrot.lane.b32.xlu1 %v837_v3, %s923_s12 }
  0x62   :  { %242 = vrot.lane.b32.xlu0 %v838_v4, %s921_s0  ;;  %221 = vrot.lane.b32.xlu1 %v838_v4, %s922_s11 }
  0x66   :  { %199 = vrot.lane.b32.xlu0 %v838_v4, %s923_s12 }
  0x74   :  { %v176_v7 = vpop.permute.xlu0 %175  ;;  %v174_v8 = vpop.permute.xlu1 %173 }
  0x75   :  { %v180_v9 = vsel %vm179_vm1, %v174_v8, %v176_v7 }
  0x78   :  { %v178_v10 = vpop.permute.xlu0 %177  ;;  %v155_v11 = vpop.permute.xlu1 %154 }
  0x79   :  { %v181_v12 = vsel %vm179_vm1, %v176_v7, %v178_v10  ;;  %187 = vst.msk [vmem:[#allocation2 + $0x150] sm:$0xff] %vm18_vm0, %v178_v10  ;;  %vm307_vm1 = vcmask 97280  }
  0x7a   :  { %443 = vmatprep.subr.mxu0 %v181_v12 }
  0x7b   :  { %444 = vmatpush1.msra.mxu0 %v180_v9 }
  0x7c   :  { %v157_v13 = vpop.permute.xlu0 %156  ;;  %v153_v14 = vpop.permute.xlu1 %152 }
  0x7d   :  { %v160_v15 = vsel %vm158_vm2, %v155_v11, %v157_v13  ;;  %166 = vst.msk [vmem:[#allocation2 + $0x128] sm:$0xff] %vm18_vm0, %v157_v13  ;;  %v159_v16 = vsel %vm158_vm2, %v153_v14, %v155_v11  ;;  %vm286_vm2 = vcmask 105472  }
  0x7e   :  { %445 = vmatprep.subr.mxu0 %v160_v15 }
  0x7f   :  { %446 = vmatpush1.msra.mxu0 %v159_v16 }
  0x80   :  { %v136_v17 = vpop.permute.xlu1 %135  ;;  %v134_v18 = vpop.permute.xlu0 %133 }
  0x81   :  { %145 = vst.msk [vmem:[#allocation2 + $0x100] sm:$0xff] %vm18_vm0, %v136_v17  ;;  %v139_v19 = vsel %vm137_vm3, %v134_v18, %v136_v17 }
  0x82   :  { %447 = vmatprep.subr.mxu0 %v139_v19 }
  0x84   :  { %v132_v20 = vpop.permute.xlu0 %131  ;;  %v113_v21 = vpop.permute.xlu1 %112 }
  0x85   :  { %v138_v22 = vsel %vm137_vm3, %v132_v20, %v134_v18  ;;  %vm265_vm3 = vcmask 113664  }
  0x86   :  { %448 = vmatpush1.msra.mxu0 %v138_v22 }
  0x88   :  { %v115_v23 = vpop.permute.xlu0 %114  ;;  %v111_v24 = vpop.permute.xlu1 %110 }
  0x89   :  { %v118_v25 = vsel %vm116_vm4, %v113_v21, %v115_v23  ;;  %124 = vst.msk [vmem:[#allocation2 + $0xd8] sm:$0xff] %vm18_vm0, %v115_v23  ;;  %v117_v26 = vsel %vm116_vm4, %v111_v24, %v113_v21  ;;  %vm244_vm4 = vcmask 244736  }
  0x8a   :  { %449 = vmatprep.subr.mxu0 %v118_v25 }
  0x8b   :  { %450 = vmatpush1.msra.mxu0 %v117_v26 }
  0x8c   :  { %v94_v27 = vpop.permute.xlu1 %93  ;;  %v92_v28 = vpop.permute.xlu0 %91 }
  0x8d   :  { %103 = vst.msk [vmem:[#allocation2 + $0xb0] sm:$0xff] %vm18_vm0, %v94_v27  ;;  %v97_v29 = vsel %vm95_vm5, %v92_v28, %v94_v27 }
  0x8e   :  { %451 = vmatprep.subr.mxu0 %v97_v29 }
  0x90   :  { %v90_v30 = vpop.permute.xlu0 %89  ;;  %v71_v31 = vpop.permute.xlu1 %70 }
  0x91   :  { %v96_v32 = vsel %vm95_vm5, %v90_v30, %v92_v28  ;;  %vm223_vm5 = vcmask 252928  }
  0x92   :  { %452 = vmatpush1.msra.mxu0 %v96_v32 }
  0x94   :  { %v73_v33 = vpop.permute.xlu0 %72  ;;  %v69_v34 = vpop.permute.xlu1 %68 }
  0x95   :  { %v76_v35 = vsel %vm74_vm6, %v71_v31, %v73_v33  ;;  %82 = vst.msk [vmem:[#allocation2 + $0x88] sm:$0xff] %vm18_vm0, %v73_v33  ;;  %v75_v36 = vsel %vm74_vm6, %v69_v34, %v71_v31 }
  0x96   :  { %453 = vmatprep.subr.mxu0 %v76_v35 }
  0x97   :  { %454 = vmatpush1.msra.mxu0 %v75_v36 }
  0x98   :  { %v52_v37 = vpop.permute.xlu1 %51  ;;  %v50_v38 = vpop.permute.xlu0 %49 }
  0x99   :  { %61 = vst.msk [vmem:[#allocation2 + $0x60] sm:$0xff] %vm18_vm0, %v52_v37  ;;  %v55_v39 = vsel %vm53_vm7, %v50_v38, %v52_v37 }
  0x9a   :  { %455 = vmatprep.subr.mxu0 %v55_v39 }
  0x9c   :  { %v48_v40 = vpop.permute.xlu0 %47  ;;  %v29_v41 = vpop.permute.xlu1 %28 }
  0x9d   :  { %v54_v42 = vsel %vm53_vm7, %v48_v40, %v50_v38 }
  0x9e   :  { %456 = vmatpush1.msra.mxu0 %v54_v42 }
  0xa0   :  { %v31_v43 = vpop.permute.xlu0 %30  ;;  %v27_v44 = vpop.permute.xlu1 %26 }
  0xa1   :  { %v34_v45 = vsel %vm32_vm8, %v29_v41, %v31_v43  ;;  %40 = vst.msk [vmem:[#allocation2 + $0x38] sm:$0xff] %vm18_vm0, %v31_v43  ;;  %v33_v46 = vsel %vm32_vm8, %v27_v44, %v29_v41 }
  0xa2   :  { %457 = vmatprep.subr.mxu0 %v34_v45 }
  0xa3   :  { %458 = vmatpush1.msra.mxu0 %v33_v46 }
  0xa4   :  { %v367_v47 = vpop.permute.xlu0 %366  ;;  %v369_v48 = vpop.permute.xlu1 %368  ;;  %459 = vmatprep.subr.mxu0 %v949_v0 }
  0xa5   :  { %v372_v50 = vsel %vm370_vm10, %v367_v47, %v369_v48  ;;  %378 = vst.msk [vmem:[#allocation2 + $0x160] sm:$0xff] %vm1116_vm9, %v369_v48  ;;  %460 = vmatpush1.msra.mxu0 %v954_v1 }
  0xa6   :  { %514 = vmatprep.subr.mxu1 %v372_v50  ;;  %855 = vmatprep.subr.mxu0 %v914_v5 }
  0xa7   :  { %839 = vmatmul.mubr.msk.f32.vlgmr.msra.gmra.mxu0 %vm425_vm11, %v999_v49 }
  0xa8   :  { %v365_v51 = vpop.permute.xlu0 %364  ;;  %v346_v52 = vpop.permute.xlu1 %345  ;;  %873 = vmatprep.mubr.msk.f32.mxu0 %vm924_vm13, %v914_v5 }
  0xa9   :  { %v371_v53 = vsel %vm370_vm10, %v365_v51, %v367_v47  ;;  %v663_v51 = vlaneseq }
  0xaa   :  { %376 = vst.msk [vmem:[#allocation2 + $0x150] sm:$0xff] %vm206_vm12, %v371_v53 }
  0xac   :  { %v348_v54 = vpop.permute.xlu0 %347  ;;  %v344_v55 = vpop.permute.xlu1 %343  ;;  %v424_v56 = vld [vmem:[#allocation2 + $0x160] sm:$0xff] }
  0xad   :  { %v351_v57 = vsel %vm349_vm14, %v346_v52, %v348_v54  ;;  %357 = vst.msk [vmem:[#allocation2 + $0x138] sm:$0xff] %vm1116_vm9, %v348_v54  ;;  %v350_v58 = vsel %vm349_vm14, %v344_v55, %v346_v52  ;;  %856 = vmatpush3.msra.mxu0 %v424_v56  ;;  %v1057_v52 = vand.u32 127, %v663_v51 }
  0xae   :  { %355 = vst.msk [vmem:[#allocation2 + $0x128] sm:$0xff] %vm206_vm12, %v350_v58  ;;  %857 = vmatprep.subr.mxu0 %v914_v5 }
  0xaf   :  { %v666_v53 = vadd.s32 256, %v1057_v52 }
  0xb0   :  { %v325_v59 = vpop.permute.xlu0 %324  ;;  %v327_v60 = vpop.permute.xlu1 %326 }
  0xb1   :  { %v330_v61 = vsel %vm328_vm15, %v325_v59, %v327_v60  ;;  %336 = vst.msk [vmem:[#allocation2 + $0x110] sm:$0xff] %vm1116_vm9, %v327_v60  ;;  %v422_v62 = vld [vmem:[#allocation2 + $0x150] sm:$0xff] }
  0xb2   :  { %515 = vmatpush1.msra.mxu1 %v422_v62 }
  0xb3   :  { %516 = vmatprep.subr.mxu1 %v351_v57  ;;  %v1068_v57 = vmul.u32.u64.low 3817748708, %v666_v53  ;;  %v1069_v58 = vmul.u32.u64.high 3817748708, %v666_v53, %v1068_v57 }
  0xb4   :  { %v323_v63 = vpop.permute.xlu0 %322  ;;  %v302_v0 = vpop.permute.xlu1 %301  ;;  %v419_v1 = vld [vmem:[#allocation2 + $0x138] sm:$0xff] }
  0xb5   :  { %v329_v2 = vsel %vm328_vm15, %v323_v63, %v325_v59  ;;  %313 = vst.msk [vmem:[#allocation2 + $0xd8] sm:$0xff] %vm206_vm12, %v302_v0  ;;  %858 = vmatpush3.msra.mxu0 %v419_v1  ;;  %v417_v3 = vld [vmem:[#allocation2 + $0x128] sm:$0xff]  ;;  %v667_v59 = vadd.s32 384, %v1057_v52  ;;  %v668_v63 = vadd.s32 512, %v1057_v52  ;;  %v697_v1 = vshrl.u32 %v1069_v58, 4 }
  0xb6   :  { %334 = vst.msk [vmem:[#allocation2 + $0x100] sm:$0xff] %vm206_vm12, %v329_v2  ;;  %517 = vmatpush1.msra.mxu1 %v417_v3  ;;  %859 = vmatprep.subr.mxu0 %v914_v5 }
  0xb7   :  { %518 = vmatprep.subr.mxu1 %v330_v61  ;;  %v1072_v60 = vmul.u32.u64.low 3817748708, %v667_v59  ;;  %v1073_v61 = vmul.u32.u64.high 3817748708, %v667_v59, %v1072_v60 }
  0xb8   :  { %v304_v4 = vpop.permute.xlu0 %303  ;;  %v281_v6 = vpop.permute.xlu1 %280  ;;  %v414_v7 = vld [vmem:[#allocation2 + $0x110] sm:$0xff] }
  0xb9   :  { %v308_v8 = vsel %vm307_vm1, %v302_v0, %v304_v4  ;;  %292 = vst.msk [vmem:[#allocation2 + $0xb0] sm:$0xff] %vm206_vm12, %v281_v6  ;;  %860 = vmatpush3.msra.mxu0 %v414_v7  ;;  %v698_v7 = vmul.u32 18, %v697_v1 }
  0xba   :  { %861 = vmatprep.subr.mxu0 %v914_v5 }
  0xbc   :  { %v283_v9 = vpop.permute.xlu0 %282  ;;  %v260_v10 = vpop.permute.xlu1 %259  ;;  %v407_v13 = vld [vmem:[#allocation2 + $0xd8] sm:$0xff] }
  0xbd   :  { %v287_v11 = vsel %vm286_vm2, %v281_v6, %v283_v9  ;;  %271 = vst.msk [vmem:[#allocation2 + $0x88] sm:$0xff] %vm206_vm12, %v260_v10  ;;  %v412_v12 = vld [vmem:[#allocation2 + $0x100] sm:$0xff] }
  0xbe   :  { %519 = vmatpush1.msra.mxu1 %v412_v12 }
  0xbf   :  { %520 = vmatprep.subr.mxu1 %v308_v8  ;;  %v708_v8 = vshrl.u32 %v1073_v61, 4 }
  0xc0   :  { %v262_v14 = vpop.permute.xlu0 %261  ;;  %v306_v15 = vpop.permute.xlu1 %305  ;;  %521 = vmatpush1.msra.mxu1 %v407_v13  ;;  %v402_v16 = vld [vmem:[#allocation2 + $0xb0] sm:$0xff] }
  0xc1   :  { %v266_v17 = vsel %vm265_vm3, %v260_v10, %v262_v14  ;;  %v309_v18 = vsel %vm307_vm1, %v304_v4, %v306_v15  ;;  %522 = vmatprep.subr.mxu1 %v287_v11  ;;  %v1079_v3 = vmul.u32.u64.low 3817748708, %v668_v63  ;;  %v1080_v4 = vmul.u32.u64.high 3817748708, %v668_v63, %v1079_v3 }
  0xc2   :  { %315 = vst.msk [vmem:[#allocation2 + $0xe8] sm:$0xff] %vm1116_vm9, %v309_v18  ;;  %523 = vmatpush1.msra.mxu1 %v402_v16  ;;  %v699_v11 = vsub.s32 %v666_v53, %v698_v7  ;;  %v709_v12 = vmul.u32 18, %v708_v8 }
  0xc3   :  { %524 = vmatprep.subr.mxu1 %v266_v17  ;;  %v719_v13 = vshrl.u32 %v1080_v4, 4 }
  0xc4   :  { %v239_v19 = vpop.permute.xlu0 %238  ;;  %v241_v20 = vpop.permute.xlu1 %240  ;;  %v397_v21 = vld [vmem:[#allocation2 + $0x88] sm:$0xff]  ;;  %vm731_vm13 = vcmp.lt.s32.totalorder %v699_v11, 0  ;;  %v710_v17 = vsub.s32 %v667_v59, %v709_v12 }
  0xc5   :  { %250 = vst.msk [vmem:[#allocation2 + $0x60] sm:$0xff] %vm206_vm12, %v239_v19  ;;  %v245_v22 = vsel %vm244_vm4, %v239_v19, %v241_v20  ;;  %525 = vmatpush1.msra.mxu1 %v397_v21  ;;  %v720_v18 = vmul.u32 18, %v719_v13  ;;  %v741_v19 = vadd.s32 18, %v699_v11 }
  0xc6   :  { %526 = vmatprep.subr.mxu1 %v245_v22  ;;  %vm727_vm1 = vcmp.ne.s32.totalorder %v710_v17, 0 }
  0xc7   :  { %v721_v22 = vsub.s32 %v668_v63, %v720_v18 }
  0xc8   :  { %v285_v23 = vpop.permute.xlu0 %284  ;;  %v218_v24 = vpop.permute.xlu1 %217 }
  0xc9   :  { %v288_v25 = vsel %vm286_vm2, %v283_v9, %v285_v23  ;;  %229 = vst.msk [vmem:[#allocation2 + $0x38] sm:$0xff] %vm206_vm12, %v218_v24  ;;  %v409_v26 = vld [vmem:[#allocation2 + $0xe8] sm:$0xff]  ;;  %vm732_vm2 = vcmp.lt.s32.totalorder %v710_v17, 0 }
  0xca   :  { %294 = vst.msk [vmem:[#allocation2 + $0xc0] sm:$0xff] %vm1116_vm9, %v288_v25  ;;  %862 = vmatpush3.msra.mxu0 %v409_v26 }
  0xcb   :  { %863 = vmatprep.subr.mxu0 %v914_v5 }
  0xcc   :  { %v220_v27 = vpop.permute.xlu0 %219  ;;  %v264_v28 = vpop.permute.xlu1 %263  ;;  %v392_v29 = vld [vmem:[#allocation2 + $0x60] sm:$0xff] }
  0xcd   :  { %v224_v30 = vsel %vm223_vm5, %v218_v24, %v220_v27  ;;  %v267_v31 = vsel %vm265_vm3, %v262_v14, %v264_v28  ;;  %527 = vmatpush1.msra.mxu1 %v392_v29  ;;  %v742_v24 = vadd.s32 18, %v710_v17  ;;  %v743_v29 = vadd.s32 18, %v721_v22 }
  0xce   :  { %273 = vst.msk [vmem:[#allocation2 + $0x98] sm:$0xff] %vm1116_vm9, %v267_v31  ;;  %528 = vmatprep.subr.mxu1 %v224_v30 }
  0xd0   :  { %v196_v32 = vpop.permute.xlu0 %195  ;;  %v198_v33 = vpop.permute.xlu1 %197  ;;  %v387_v34 = vld [vmem:[#allocation2 + $0x38] sm:$0xff] }
  0xd1   :  { %207 = vst.msk [vmem:[#allocation2 + $0x10] sm:$0xff] %vm206_vm12, %v196_v32  ;;  %v201_v35 = vsel %vm18_vm0, %v196_v32, %v198_v33  ;;  %v404_v36 = vld [vmem:[#allocation2 + $0xc0] sm:$0xff]  ;;  %529 = vmatpush1.msra.mxu1 %v387_v34  ;;  %vm726_vm12 = vcmp.ne.s32.totalorder %v699_v11, 0 }
  0xd2   :  { %864 = vmatpush3.msra.mxu0 %v404_v36  ;;  %530 = vmatprep.subr.mxu1 %v201_v35  ;;  %vm736_vm15 = vmand %vm731_vm13, %vm726_vm12  ;;  %vm1119_vm12 = vcmask 523264   ;;  %vm800_vm13 = vcmask 1040384  }
  0xd3   :  { %865 = vmatprep.subr.mxu0 %v914_v5  ;;  %v746_v23 = vsel %vm736_vm15, %v741_v19, %v699_v11  ;;  %vm653_vm15 = vcmask 785408  }
  0xd4   :  { %v243_v37 = vpop.permute.xlu0 %242  ;;  %v222_v38 = vpop.permute.xlu1 %221 }
  0xd5   :  { %v246_v39 = vsel %vm244_vm4, %v241_v20, %v243_v37  ;;  %v225_v40 = vsel %vm223_vm5, %v220_v27, %v222_v38  ;;  %v399_v41 = vld [vmem:[#allocation2 + $0x98] sm:$0xff]  ;;  %vm737_vm5 = vmand %vm732_vm2, %vm727_vm1 }
  0xd6   :  { %252 = vst.msk [vmem:[#allocation2 + $0x70] sm:$0xff] %vm1116_vm9, %v246_v39  ;;  %231 = vst.msk [vmem:[#allocation2 + $0x48] sm:$0xff] %vm1116_vm9, %v225_v40  ;;  %866 = vmatpush3.msra.mxu0 %v399_v41  ;;  %v747_v27 = vsel %vm737_vm5, %v742_v24, %v710_v17 }
  0xd7   :  { %867 = vmatprep.subr.mxu0 %v914_v5 }
  0xd8   :  { %v200_v42 = vpop.permute.xlu0 %199  ;;  %v382_v43 = vld [vmem:[#allocation2 + $0x10] sm:$0xff] }
  0xd9   :  { %v202_v44 = vsel %vm18_vm0, %v198_v33, %v200_v42  ;;  %531 = vmatpush1.msra.mxu1 %v382_v43 }
  0xda   :  { %210 = vst.msk [vmem:[#allocation2 + $0x20] sm:$0xff] %vm1116_vm9, %v202_v44  ;;  %840 = vmatmul.mubr.msk.f32.vlgmr.msra.gmra.mxu1 %vm425_vm11, %v999_v49  ;;  %vm733_vm9 = vcmp.lt.s32.totalorder %v721_v22, 0 }
  0xdd   :  { %v394_v45 = vld [vmem:[#allocation2 + $0x70] sm:$0xff]  ;;  %v389_v46 = vld [vmem:[#allocation2 + $0x48] sm:$0xff] }
  0xde   :  { %868 = vmatpush3.msra.mxu0 %v394_v45 }
  0xdf   :  { %869 = vmatprep.subr.mxu0 %v914_v5 }
  0xe0   :  { %870 = vmatpush3.msra.mxu0 %v389_v46 }
  0xe1   :  { %871 = vmatprep.subr.mxu0 %v914_v5  ;;  %v384_v47 = vld [vmem:[#allocation2 + $0x20] sm:$0xff]  ;;  %v665_v5 = vadd.s32 128, %v1057_v52 }
  0xe2   :  { %872 = vmatpush3.msra.mxu0 %v384_v47 }
  0xe3   :  { %874 = vmatmul.mubr.msk.f32.vlgmr.msra.gmra.mxu0 %vm425_vm11, %v999_v49  ;;  %v1062_v49 = vmul.u32.u64.low 3817748708, %v1057_v52  ;;  %v1063_v54 = vmul.u32.u64.high 3817748708, %v1057_v52, %v1062_v49  ;;  %v1065_v55 = vmul.u32.u64.low 3817748708, %v665_v5  ;;  %v1066_v56 = vmul.u32.u64.high 3817748708, %v665_v5, %v1065_v55 }
  0xe4   :  { %v790_v49 = vshrl.u32 %v663_v51, 7 }
  0xe5   :  { %v675_v62 = vshrl.u32 %v1063_v54, 4  ;;  %v686_v0 = vshrl.u32 %v1066_v56, 4 }
  0xe6   :  { %v791_v54 = vsub.s32 %v1057_v52, %v790_v49 }
  0xe7   :  { %v676_v2 = vmul.u32 18, %v675_v62  ;;  %v687_v6 = vmul.u32 18, %v686_v0 }
  0xe9   :  { %v677_v9 = vsub.s32 %v1057_v52, %v676_v2  ;;  %v688_v10 = vsub.s32 %v665_v5, %v687_v6 }
  0xeb   :  { %vm724_vm6 = vcmp.ne.s32.totalorder %v677_v9, 0  ;;  %vm729_vm7 = vcmp.lt.s32.totalorder %v677_v9, 0  ;;  %vm725_vm8 = vcmp.ne.s32.totalorder %v688_v10, 0  ;;  %vm730_vm10 = vcmp.lt.s32.totalorder %v688_v10, 0 }
  0xec   :  { %v739_v14 = vadd.s32 18, %v677_v9  ;;  %vm1085_vm11 = vmand %vm729_vm7, %vm724_vm6  ;;  %v740_v16 = vadd.s32 18, %v688_v10  ;;  %vm751_vm6 = vcmp.lt.s32.totalorder %v746_v23, 16  ;;  %vm728_vm7 = vcmp.ne.s32.totalorder %v721_v22, 0 }
  0xed   :  { %vm735_vm14 = vmand %vm730_vm10, %vm725_vm8  ;;  %vm752_vm10 = vcmp.lt.s32.totalorder %v747_v27, 16 }
  0xee   :  { %v744_v20 = vsel %vm1085_vm11, %v739_v14, %v677_v9  ;;  %v745_v21 = vsel %vm735_vm14, %v740_v16, %v688_v10  ;;  %vm738_vm8 = vmand %vm733_vm9, %vm728_vm7  ;;  %vm802_vm14 = vcmask 58368  }
  0xef   :  { %vm749_vm3 = vcmp.lt.s32.totalorder %v744_v20, 16  ;;  %vm750_vm4 = vcmp.lt.s32.totalorder %v745_v21, 16  ;;  %v748_v36 = vsel %vm738_vm8, %v743_v29, %v721_v22  ;;  %vm1120_vm9 = vmmov %vm1119_vm12 }
  0xf0   :  { %vm753_vm11 = vcmp.lt.s32.totalorder %v748_v36, 16 }
 0x167   :  { %v495_v48 = vpop.f32.mrf.mxu0 }
 0x168   :  { %641 = vst [vmem:[%s1114_s2] sm:$0xff] %v495_v48  ;;  %v764_v25 = vsel %vm749_vm3, %v495_v48, 0.0 }
 0x169   :  { %v497_v50 = vpop.f32.mrf.mxu0  ;;  %v776_v31 = vmul.f32 %v764_v25, %v764_v25 }
 0x16a   :  { %642 = vst [vmem:[%s1114_s2 + $0x8] sm:$0xff] %v497_v50  ;;  %v765_v26 = vsel %vm750_vm4, %v497_v50, 0.0 }
 0x16b   :  { %v777_v32 = vmul.f32 %v765_v26, %v765_v26  ;;  %v769_v34 = vadd.f32 %v765_v26, %v764_v25 }
 0x16d   :  { %v781_v38 = vadd.f32 %v777_v32, %v776_v31 }
 0x19a   :  { %v566_v28 = vpop.f32.mrf.mxu1 }
 0x19b   :  { %643 = vst.msk [vmem:[%s1114_s2 + $0x10] sm:$0xff] %vm18_vm0, %v566_v28  ;;  %v766_v30 = vsel %vm751_vm6, %v566_v28, 0.0 }
 0x19c   :  { %v568_v33 = vpop.f32.mrf.mxu1  ;;  %v778_v35 = vmul.f32 %v766_v30, %v766_v30  ;;  %v770_v39 = vadd.f32 %v769_v34, %v766_v30 }
 0x19d   :  { %v767_v37 = vsel %vm752_vm10, %v568_v33, 0.0 }
 0x19e   :  { %v779_v40 = vmul.f32 %v767_v37, %v767_v37  ;;  %v782_v41 = vadd.f32 %v781_v38, %v778_v35  ;;  %v771_v43 = vadd.f32 %v770_v39, %v767_v37 }
 0x1a0   :  { %v783_v50 = vadd.f32 %v782_v41, %v779_v40 }
 0x1a3   :  { %v637_v42 = vpop.f32.mrf.mxu0 }
 0x1a4   :  { %v768_v44 = vsel %vm753_vm11, %v637_v42, 0.0 }
 0x1a5   :  { %v780_v45 = vmul.f32 %v768_v44, %v768_v44  ;;  %v875_v46 = vpop.f32.mrf.mxu0  ;;  %v772_v47 = vsel %vm1119_vm12, %v768_v44, 0.0 }
 0x1a6   :  { %v773_v48 = vadd.f32 %v772_v47, %v771_v43 }
 0x1a7   :  { %v784_v5 = vsel %vm1120_vm9, %v780_v45, 0.0 }
 0x1a8   :  { %774 = vadd.xlane.f32.xlu1 %v773_v48  ;;  %v785_v53 = vadd.f32 %v784_v5, %v783_v50 }
 0x1aa   :  { %786 = vadd.xlane.f32.xlu0 %v785_v53 }
 0x1b9   :  { %649 = vrot.lane.b32.xlu1 %v568_v33, %s925_s20 }
 0x1bd   :  { %651 = vrot.lane.b32.xlu1 %v637_v42, %s925_s20 }
 0x1c0   :  { %647 = vrot.lane.b32.xlu0 %v566_v28, %s925_s20 }
 0x231   :  { %v775_v55 = vpop.xlane.xlu1 %774 }
 0x232   :  { %v792_v57 = vrot.slane %v775_v55, %v791_v54 }
 0x233   :  { %v787_v56 = vpop.xlane.xlu0 %786 }
 0x234   :  { %v798_v58 = vrot.slane %v787_v56, %v791_v54 }
 0x235   :  { %v650_v59 = vpop.permute.xlu1 %649 }
 0x236   :  { %v801_v60 = vsel %vm800_vm13, %v792_v57, %v798_v58 }
 0x237   :  { %803 = vst.msk [vmem:[%s1115_s3] sm:$0x3] %vm802_vm14, %v801_v60  ;;  %v648_v61 = vpop.permute.xlu0 %647 }
 0x238   :  { %v654_v62 = vsel %vm653_vm15, %v648_v61, %v650_v59 }
 0x239   :  { %842 = vst [vmem:[%s1114_s2 + $0x18] sm:$0xff] %v654_v62  ;;  %v652_v51 = vpop.permute.xlu1 %651 }
 0x23a   :  { %v655_v52 = vsel %vm653_vm15, %v650_v59, %v652_v51  ;;  %844 = vst.msk [vmem:[%s1114_s2 + $0x28] sm:$0xff] %vm18_vm0, %v652_v51 }
 0x23b   :  { %843 = vst [vmem:[%s1114_s2 + $0x20] sm:$0xff] %v655_v52 }

</bundles_post_ra>
